<compile_context>
chip_gen: v5e
topology: v5e:2x2
jax: 0.10.0
libtpu: 0.0.40
codegen_flags: <defaults>
</compile_context>

<pallas_src>
import functools

import jax
import jax.numpy as jnp
from jax.experimental import pallas as pl
from jax.experimental.pallas import tpu as pltpu


_TILE_M = 512                            # rows per 1x1-matmul block
_LANE = 128                              # Cout padded to a multiple of 128
_VMEM_LIMIT_BYTES = 48 * 1024 * 1024     # explicit budget, < v7x 64 MiB VMEM
_NO_RELU = float(jnp.finfo(jnp.float32).min)   # per-channel "skip ReLU" clamp


def _round_up(x, m):
    return (x + m - 1) // m * m


def _fold_bn(gamma, beta, mean, var, eps=1e-3):
    """Eval-mode BatchNorm folded into per-channel scale/bias (f32)."""
    inv_std = jax.lax.rsqrt(var.astype(jnp.float32) + eps)
    scale = gamma.astype(jnp.float32) * inv_std
    bias = beta.astype(jnp.float32) - mean.astype(jnp.float32) * scale
    return scale, bias


# ---------------------------------------------------------------------------
# Pallas kernels
# ---------------------------------------------------------------------------
def _matmul_bn_act_kernel(x_ref, w_ref, scale_ref, bias_ref, clamp_ref, o_ref):
    """Single-K-tile MXU matmul + folded BN + per-channel clamp (ReLU)."""
    y = jnp.dot(x_ref[...], w_ref[...], preferred_element_type=jnp.float32)
    y = y * scale_ref[...] + bias_ref[...]
    o_ref[...] = jnp.maximum(y, clamp_ref[...]).astype(o_ref.dtype)


def _conv7_flat_kernel(x_ref, w_ref, scale_ref, bias_ref, o_ref, *, shift):
    """7-tap separable conv + BN + ReLU on one flattened, halo-padded image.

    x_ref:  (1, m_rows + 6*shift, Cin)  halo-padded flattened spatial tile
    w_ref:  (7, Cin, Cout_p)            per-tap weights
    o_ref:  (1, m_rows, Cout_p)
    Tap t's operand is the in-VMEM row slice x[t*shift : t*shift + m_rows]
    (no HBM im2col); shift = 1 for W-taps, W for H-taps.
    """
    m_rows, cout = o_ref.shape[1], o_ref.shape[2]
    x = x_ref[0]
    acc = jnp.zeros((m_rows, cout), jnp.float32)
    for t in range(7):                               # static unroll: 7 MXU pushes
        acc = acc + jnp.dot(x[t * shift:t * shift + m_rows, :], w_ref[t],
                            preferred_element_type=jnp.float32)
    y = acc * scale_ref[...] + bias_ref[...]
    o_ref[0] = jnp.maximum(y, 0.0).astype(o_ref.dtype)


def _avgpool3x3_kernel(x_ref, bias_ref, o_ref, *, row_stride):
    """3x3/stride-1 avg pool (count_include_pad=True) + bias + ReLU, flattened."""
    m_rows, c = o_ref.shape[1], o_ref.shape[2]
    x = x_ref[0]
    acc = jnp.zeros((m_rows, c), jnp.float32)
    for di in range(3):                              # 9 shifted adds on the VPU
        for dj in range(3):
            s = di * row_stride + dj
            acc = acc + x[s:s + m_rows, :].astype(jnp.float32)
    y = acc * (1.0 / 9.0) + bias_ref[...]
    o_ref[0] = jnp.maximum(y, 0.0).astype(o_ref.dtype)


# ---------------------------------------------------------------------------
# Wrappers
# ---------------------------------------------------------------------------
def _pick_tile_m(m):
    tile = min(_TILE_M, _round_up(m, 16))
    # Keep >= 2 M tiles so the "parallel" axis can shard across v7x's 2 TCs.
    while tile > 128 and (m + tile - 1) // tile < 2:
        tile = max(128, _round_up(tile // 2, 16))
    return tile


def conv1x1_bn_act(x_nhwc, w_kc, scale, bias, clamp, out_dtype=jnp.bfloat16):
    """Fused 1x1 conv + folded BN + per-channel-clamp activation (NHWC)."""
    n, h, w, cin = x_nhwc.shape
    cout = w_kc.shape[1]
    m = n * h * w

    cout_p = _round_up(cout, _LANE)
    tile_m = _pick_tile_m(m)
    m_p = _round_up(m, tile_m)

    xs = jnp.pad(x_nhwc.astype(jnp.bfloat16).reshape(m, cin),
                 ((0, m_p - m), (0, 0)))
    wb = jnp.pad(w_kc.astype(jnp.float32),
                 ((0, 0), (0, cout_p - cout))).astype(jnp.bfloat16)
    scale_p = jnp.pad(scale, (0, cout_p - cout)).reshape(1, cout_p)
    bias_p = jnp.pad(bias, (0, cout_p - cout)).reshape(1, cout_p)
    clamp_p = jnp.pad(clamp, (0, cout_p - cout)).reshape(1, cout_p)

    out = pl.pallas_call(
        _matmul_bn_act_kernel,
        out_shape=jax.ShapeDtypeStruct((m_p, cout_p), out_dtype),
        grid_spec=pltpu.PrefetchScalarGridSpec(
            num_scalar_prefetch=0,
            grid=(m_p // tile_m,),
            in_specs=[
                pl.BlockSpec((tile_m, cin), lambda i: (i, 0)),
                pl.BlockSpec((cin, cout_p), lambda i: (0, 0)),
                pl.BlockSpec((1, cout_p), lambda i: (0, 0)),
                pl.BlockSpec((1, cout_p), lambda i: (0, 0)),
                pl.BlockSpec((1, cout_p), lambda i: (0, 0)),
            ],
            out_specs=pl.BlockSpec((tile_m, cout_p), lambda i: (i, 0)),
        ),
        compiler_params=pltpu.CompilerParams(
            dimension_semantics=("parallel",),
            vmem_limit_bytes=_VMEM_LIMIT_BYTES),
    )(xs, wb, scale_p, bias_p, clamp_p)

    return out[:m].reshape(n, h, w, cout_p)[..., :cout]


def conv7_bn_relu(x_nhwc, w_oihw, gamma, beta, mean, var, eps=1e-3,
                  out_dtype=jnp.bfloat16):
    """'same'-padded (1,7)/(7,1) conv + folded BN + ReLU, without HBM im2col."""
    n, h, w, cin = x_nhwc.shape
    cout, cin_w, kh, kw = w_oihw.shape
    assert cin_w == cin and (kh, kw) in ((1, 7), (7, 1)), (w_oihw.shape, cin)

    x_bf = x_nhwc.astype(jnp.bfloat16)
    if kw == 7:                          # taps shift along W (stride 1)
        wp = w + 6
        xp = jnp.pad(x_bf, ((0, 0), (0, 0), (3, 3), (0, 0)))
        xf = jnp.pad(xp.reshape(n, h * wp, cin), ((0, 0), (3, 3), (0, 0)))
        m_rows, shift = h * wp, 1
    else:                                # taps shift along H (stride W)
        xf = jnp.pad(x_bf.reshape(n, h * w, cin),
                     ((0, 0), (3 * w, 3 * w), (0, 0)))
        m_rows, shift = h * w, w

    # (O,I,KH,KW) -> (KH,KW,I,O) -> (7, Cin, Cout); tap t reads padded offset t.
    wt = jnp.transpose(w_oihw, (2, 3, 1, 0)).reshape(7, cin, cout)
    scale, bias = _fold_bn(gamma, beta, mean, var, eps)

    cout_p = _round_up(cout, _LANE)
    wt = jnp.pad(wt, ((0, 0), (0, 0), (0, cout_p - cout))).astype(jnp.bfloat16)
    scale_p = jnp.pad(scale, (0, cout_p - cout)).reshape(1, cout_p)
    bias_p = jnp.pad(bias, (0, cout_p - cout)).reshape(1, cout_p)

    out = pl.pallas_call(
        functools.partial(_conv7_flat_kernel, shift=shift),
        out_shape=jax.ShapeDtypeStruct((n, m_rows, cout_p), out_dtype),
        grid_spec=pltpu.PrefetchScalarGridSpec(
            num_scalar_prefetch=0,
            grid=(n,),
            in_specs=[
                pl.BlockSpec((1, m_rows + 6 * shift, cin), lambda i: (i, 0, 0)),
                pl.BlockSpec((7, cin, cout_p), lambda i: (0, 0, 0)),
                pl.BlockSpec((1, cout_p), lambda i: (0, 0)),
                pl.BlockSpec((1, cout_p), lambda i: (0, 0)),
            ],
            out_specs=pl.BlockSpec((1, m_rows, cout_p), lambda i: (i, 0, 0)),
        ),
        compiler_params=pltpu.CompilerParams(
            dimension_semantics=("parallel",),
            vmem_limit_bytes=_VMEM_LIMIT_BYTES),
    )(xf, wt, scale_p, bias_p)

    if kw == 7:
        # Columns computed on the padded-W grid are garbage; drop them here.
        return out.reshape(n, h, wp, cout_p)[:, :, 3:3 + w, :cout]
    return out.reshape(n, h, w, cout_p)[..., :cout]


def avgpool3x3_bias_relu(x_nhwc, bias, out_dtype=jnp.bfloat16):
    """3x3/stride-1 average pool (count_include_pad=True) + bias + ReLU."""
    n, h, w, c = x_nhwc.shape
    wp = w + 2
    xp = jnp.pad(x_nhwc.astype(jnp.bfloat16), ((0, 0), (0, 0), (1, 1), (0, 0)))
    xf = jnp.pad(xp.reshape(n, h * wp, c), ((0, 0), (wp + 1, wp + 1), (0, 0)))
    m_rows = h * wp
    bias2 = bias.astype(jnp.float32).reshape(1, c)

    out = pl.pallas_call(
        functools.partial(_avgpool3x3_kernel, row_stride=wp),
        out_shape=jax.ShapeDtypeStruct((n, m_rows, c), out_dtype),
        grid_spec=pltpu.PrefetchScalarGridSpec(
            num_scalar_prefetch=0,
            grid=(n,),
            in_specs=[
                pl.BlockSpec((1, m_rows + 2 * wp + 2, c), lambda i: (i, 0, 0)),
                pl.BlockSpec((1, c), lambda i: (0, 0)),
            ],
            out_specs=pl.BlockSpec((1, m_rows, c), lambda i: (i, 0, 0)),
        ),
        compiler_params=pltpu.CompilerParams(
            dimension_semantics=("parallel",),
            vmem_limit_bytes=_VMEM_LIMIT_BYTES),
    )(xf, bias2)

    return out.reshape(n, h, wp, c)[:, :, 1:1 + w, :]


# ---------------------------------------------------------------------------
# InceptionC forward (NCHW in / NCHW out, NHWC + bf16 inside)
# ---------------------------------------------------------------------------
def inception_c_forward(x_nchw, params):
    x = jnp.transpose(x_nchw, (0, 2, 3, 1))            # NHWC
    n, h, w, cin = x.shape
    c7 = params["branch7x7_1"][0].shape[0]

    # ---- fused 1x1 stems: branch1x1 | branch7x7_1 | branch7x7dbl_1 | pool 1x1
    # branch_pool uses avgpool<->1x1-conv commutation: its channels get only
    # scale*conv(x) here (clamp=-inf disables ReLU, bias deferred); the 3x3
    # average pool + bias + ReLU run afterwards over just 192 channels.
    w_parts, s_parts, b_parts, c_parts = [], [], [], []
    pool_bias = None
    for name in ("branch1x1", "branch7x7_1", "branch7x7dbl_1", "branch_pool"):
        wts, gamma, beta, mean, var = params[name]
        scale, bias = _fold_bn(gamma, beta, mean, var)
        w_parts.append(wts.reshape(wts.shape[0], cin).T)        # (Cin, Cout_i)
        s_parts.append(scale)
        if name == "branch_pool":
            pool_bias = bias
            b_parts.append(jnp.zeros_like(bias))
            c_parts.append(jnp.full_like(bias, _NO_RELU))
        else:
            b_parts.append(bias)
            c_parts.append(jnp.zeros_like(bias))

    head = conv1x1_bn_act(
        x,
        jnp.concatenate(w_parts, axis=1),
        jnp.concatenate(s_parts),
        jnp.concatenate(b_parts),
        jnp.concatenate(c_parts))

    o1, o2, o3 = 192, 192 + c7, 192 + 2 * c7
    b1x1 = head[..., :o1]
    b7 = head[..., o1:o2]
    bd = head[..., o2:o3]
    bpre = head[..., o3:o3 + 192]        # scale*conv(x), pre-pool, no bias/ReLU

    b7 = conv7_bn_relu(b7, *params["branch7x7_2"])
    b7 = conv7_bn_relu(b7, *params["branch7x7_3"])

    bd = conv7_bn_relu(bd, *params["branch7x7dbl_2"])
    bd = conv7_bn_relu(bd, *params["branch7x7dbl_3"])
    bd = conv7_bn_relu(bd, *params["branch7x7dbl_4"])
    bd = conv7_bn_relu(bd, *params["branch7x7dbl_5"])

    bpool = avgpool3x3_bias_relu(bpre, pool_bias)

    out = jnp.concatenate([b1x1, b7, bd, bpool], axis=-1)       # torch.cat(dim=1)
    return jnp.transpose(out, (0, 3, 1, 2)).astype(x_nchw.dtype)


# ---------------------------------------------------------------------------
# Deterministic parameter init (synthetic weights)
# ---------------------------------------------------------------------------
def _init_conv_bn(key, cin, cout, kh, kw):
    kconv, kg, kb, km, kv = jax.random.split(key, 5)
    fan_in = cin * kh * kw
    w = jax.random.normal(kconv, (cout, cin, kh, kw), jnp.float32) / jnp.sqrt(
        float(fan_in))
    gamma = 1.0 + 0.1 * jax.random.normal(kg, (cout,), jnp.float32)
    beta = 0.1 * jax.random.normal(kb, (cout,), jnp.float32)
    mean = 0.1 * jax.random.normal(km, (cout,), jnp.float32)
    var = jax.random.uniform(kv, (cout,), jnp.float32, minval=0.5, maxval=1.5)
    return (w, gamma, beta, mean, var)


def init_inception_c_params(key, in_channels, c7):
    specs = {
        "branch1x1":      (in_channels, 192, 1, 1),
        "branch7x7_1":    (in_channels, c7, 1, 1),
        "branch7x7_2":    (c7, c7, 1, 7),
        "branch7x7_3":    (c7, 192, 7, 1),
        "branch7x7dbl_1": (in_channels, c7, 1, 1),
        "branch7x7dbl_2": (c7, c7, 7, 1),
        "branch7x7dbl_3": (c7, c7, 1, 7),
        "branch7x7dbl_4": (c7, c7, 7, 1),
        "branch7x7dbl_5": (c7, 192, 1, 7),
        "branch_pool":    (in_channels, 192, 1, 1),
    }
    keys = jax.random.split(key, len(specs))
    return {
        name: _init_conv_bn(k, *spec)
        for k, (name, spec) in zip(keys, specs.items())
    }


# ---------------------------------------------------------------------------
# Pure-JAX reference (for correctness check)
# ---------------------------------------------------------------------------
def _ref_conv_bn_relu(x_nchw, w, gamma, beta, mean, var, eps=1e-3):
    kh, kw = w.shape[2], w.shape[3]
    y = jax.lax.conv_general_dilated(
        x_nchw, w, (1, 1),
        ((kh // 2, kh // 2), (kw // 2, kw // 2)),
        dimension_numbers=("NCHW", "OIHW", "NCHW"))
    inv_std = 1.0 / jnp.sqrt(var + eps)
    scale = (gamma * inv_std)[None, :, None, None]
    bias = (beta - mean * gamma * inv_std)[None, :, None, None]
    return jnp.maximum(y * scale + bias, 0.0)


def _ref_forward(x_nchw, params):
    b1 = _ref_conv_bn_relu(x_nchw, *params["branch1x1"])
    b7 = _ref_conv_bn_relu(x_nchw, *params["branch7x7_1"])
    b7 = _ref_conv_bn_relu(b7, *params["branch7x7_2"])
    b7 = _ref_conv_bn_relu(b7, *params["branch7x7_3"])
    bd = _ref_conv_bn_relu(x_nchw, *params["branch7x7dbl_1"])
    bd = _ref_conv_bn_relu(bd, *params["branch7x7dbl_2"])
    bd = _ref_conv_bn_relu(bd, *params["branch7x7dbl_3"])
    bd = _ref_conv_bn_relu(bd, *params["branch7x7dbl_4"])
    bd = _ref_conv_bn_relu(bd, *params["branch7x7dbl_5"])
    pooled = jax.lax.reduce_window(
        x_nchw, 0.0, jax.lax.add, (1, 1, 3, 3), (1, 1, 1, 1),
        ((0, 0), (0, 0), (1, 1), (1, 1))) / 9.0
    bp = _ref_conv_bn_relu(pooled, *params["branch_pool"])
    return jnp.concatenate([b1, b7, bd, bp], axis=1)


# ---------------------------------------------------------------------------
if __name__ == "__main__":
    key = jax.random.PRNGKey(0)
    k_params, k_x = jax.random.split(key)

    in_channels, channels_7x7 = 16, 8
    N, H, W = 2, 16, 16

    params = init_inception_c_params(k_params, in_channels, channels_7x7)
    x = jax.random.normal(k_x, (N, in_channels, H, W), jnp.float32)

    out = jax.block_until_ready(inception_c_forward(x, params))
    assert out.shape == (N, 192 * 4, H, W), out.shape

    ref = jax.block_until_ready(_ref_forward(x, params))
    # bf16 MXU operands / bf16 intermediates with f32 accumulation
    # -> slightly loosened tolerance (inference-grade).
    if not jnp.allclose(out, ref, atol=5e-2, rtol=5e-2):
        max_err = jnp.max(jnp.abs(out - ref))
        raise AssertionError(f"mismatch vs reference, max abs err={max_err}")

    print("KERNEL_OK")
</pallas_src>

<mosaic_0001>
module attributes {stable_mosaic.version = 11 : i64} {
  func.func @_matmul_bn_act_kernel(%arg0: i32, %arg1: memref<256x16xbf16, #tpu.memory_space<vmem>>, %arg2: memref<16x512xbf16, #tpu.memory_space<vmem>>, %arg3: memref<1x512xf32, #tpu.memory_space<vmem>>, %arg4: memref<1x512xf32, #tpu.memory_space<vmem>>, %arg5: memref<1x512xf32, #tpu.memory_space<vmem>>, %arg6: memref<256x512xbf16, #tpu.memory_space<vmem>>) attributes {dimension_semantics = [#tpu.dimension_semantics<parallel>], iteration_bounds = array<i64: 2>, scalar_prefetch = 0 : i64, scratch_operands = 0 : i64, tpu.core_type = #tpu.core_type<tc>, window_params = [{transform_indices = @transform_0, window_bounds = array<i64: 256, 16>}, {pipeline_mode = #tpu.pipeline_mode<synchronous>, transform_indices = @transform_1, window_bounds = array<i64: 16, 512>}, {pipeline_mode = #tpu.pipeline_mode<synchronous>, transform_indices = @transform_2, window_bounds = array<i64: 1, 512>}, {pipeline_mode = #tpu.pipeline_mode<synchronous>, transform_indices = @transform_3, window_bounds = array<i64: 1, 512>}, {pipeline_mode = #tpu.pipeline_mode<synchronous>, transform_indices = @transform_4, window_bounds = array<i64: 1, 512>}, {transform_indices = @transform_5, window_bounds = array<i64: 256, 512>}]} {
    %c0 = arith.constant 0 : index
    %c0_0 = arith.constant 0 : index
    %0 = vector.load %arg1[%c0, %c0_0] : memref<256x16xbf16, #tpu.memory_space<vmem>>, vector<256x16xbf16>
    %c0_1 = arith.constant 0 : index
    %c0_2 = arith.constant 0 : index
    %1 = vector.load %arg2[%c0_1, %c0_2] : memref<16x512xbf16, #tpu.memory_space<vmem>>, vector<16x512xbf16>
    %cst = arith.constant dense<0.000000e+00> : vector<256x512xf32>
    %2 = tpu.matmul %0, %1, %cst {dimension_numbers = #tpu.dot_dimension_numbers<[1], [0], [0], [1], [0, 0, 1, 1], [], []>} : vector<256x16xbf16>, vector<16x512xbf16>, vector<256x512xf32> -> vector<256x512xf32>
    %c0_3 = arith.constant 0 : index
    %c0_4 = arith.constant 0 : index
    %3 = vector.load %arg3[%c0_3, %c0_4] : memref<1x512xf32, #tpu.memory_space<vmem>>, vector<1x512xf32>
    %4 = vector.broadcast %3 : vector<1x512xf32> to vector<256x512xf32>
    %5 = arith.mulf %2, %4 : vector<256x512xf32>
    %c0_5 = arith.constant 0 : index
    %c0_6 = arith.constant 0 : index
    %6 = vector.load %arg4[%c0_5, %c0_6] : memref<1x512xf32, #tpu.memory_space<vmem>>, vector<1x512xf32>
    %7 = vector.broadcast %6 : vector<1x512xf32> to vector<256x512xf32>
    %8 = arith.addf %5, %7 : vector<256x512xf32>
    %c0_7 = arith.constant 0 : index
    %c0_8 = arith.constant 0 : index
    %9 = vector.load %arg5[%c0_7, %c0_8] : memref<1x512xf32, #tpu.memory_space<vmem>>, vector<1x512xf32>
    %10 = vector.broadcast %9 : vector<1x512xf32> to vector<256x512xf32>
    %11 = arith.maximumf %8, %10 : vector<256x512xf32>
    %12 = arith.truncf %11 : vector<256x512xf32> to vector<256x512xbf16>
    %c0_9 = arith.constant 0 : index
    %c0_10 = arith.constant 0 : index
    %13 = vector.load %arg6[%c0_9, %c0_10] : memref<256x512xbf16, #tpu.memory_space<vmem>>, vector<256x512xbf16>
    tpu.vector_store %arg6[%c0_9, %c0_10], %12 {strides = array<i32>} : memref<256x512xbf16, #tpu.memory_space<vmem>>, vector<256x512xbf16>,
    return
  }
  func.func @transform_0(%arg0: i32) -> (i32, i32) {
    %c0_i32 = arith.constant 0 : i32
    %c0_i32_0 = arith.constant 0 : i32
    return %arg0, %c0_i32 : i32, i32
  }
  func.func @transform_1(%arg0: i32) -> (i32, i32) {
    %c0_i32 = arith.constant 0 : i32
    %c0_i32_0 = arith.constant 0 : i32
    %c0_i32_1 = arith.constant 0 : i32
    return %c0_i32, %c0_i32_0 : i32, i32
  }
  func.func @transform_2(%arg0: i32) -> (i32, i32) {
    %c0_i32 = arith.constant 0 : i32
    %c0_i32_0 = arith.constant 0 : i32
    %c0_i32_1 = arith.constant 0 : i32
    return %c0_i32, %c0_i32_0 : i32, i32
  }
  func.func @transform_3(%arg0: i32) -> (i32, i32) {
    %c0_i32 = arith.constant 0 : i32
    %c0_i32_0 = arith.constant 0 : i32
    %c0_i32_1 = arith.constant 0 : i32
    return %c0_i32, %c0_i32_0 : i32, i32
  }
  func.func @transform_4(%arg0: i32) -> (i32, i32) {
    %c0_i32 = arith.constant 0 : i32
    %c0_i32_0 = arith.constant 0 : i32
    %c0_i32_1 = arith.constant 0 : i32
    return %c0_i32, %c0_i32_0 : i32, i32
  }
  func.func @transform_5(%arg0: i32) -> (i32, i32) {
    %c0_i32 = arith.constant 0 : i32
    %c0_i32_0 = arith.constant 0 : i32
    return %arg0, %c0_i32 : i32, i32
  }
}

</mosaic_0001>

<bundles_post_ra>
// kernel: tpu_custom_call.1
= control target key start
LH: loop header
LB: loop body
LE: loop exit
PB: predicated region body
PF: predicated region fallthrough
CT: control target
= control target key end

     0   :  { %10 = vsyncpa [#allocation3], 0  ;;  %s2383_s0 = inlined_call_operand.vmem [shape: bf16[512,16], index: 0, kind: input, shape index: {}]   ;;  %s2384_s1 = inlined_call_operand.vmem [shape: bf16[16,512], index: 1, kind: input, shape index: {}]   ;;  %s2385_s2 = inlined_call_operand.vmem [shape: f32[1,512], index: 2, kind: input, shape index: {}]   ;;  %s2386_s3 = inlined_call_operand.vmem [shape: f32[1,512], index: 3, kind: input, shape index: {}]   ;;  %s2387_s4 = inlined_call_operand.vmem [shape: f32[1,512], index: 4, kind: input, shape index: {}]   ;;  %s2388_s5 = inlined_call_operand.hbm [shape: bf16[512,512], index: 5, kind: output, shape index: {}]  }
   0x1   :  { %12 = vsyncpa [#allocation3 + $0x1], 0  ;;  %s1705_s18 = smov 0   ;;  %s1707_s19 = smov 0  }
   0x2   :  { %s1709_s20 = smov 0   ;;  %s1711_s21 = smov 0  }
   0x3 LB: > { %s1726_s22 = sadd.s32 4294967295, %s1671_s21   ;;  %s1389_s23 = sadd.s32 4294967294, %s1671_s21   ;;  %s1671_s21 = sphi %s1711_s21, %s2394_s21   ;;  %s1667_s20 = sphi %s1709_s20, %s2393_s20   ;;  %s1663_s19 = sphi %s1707_s19, %s2392_s19   ;;  %s1659_s18 = sphi %s1705_s18, %s2391_s18  }
   0x4   : > { %s1730_s24 = sadd.s32 1, %s1671_s21   ;;  %s135_s25 = sadd.s32 1, %s1667_s20 }
   0x5   : > { %s132_s26 = ssub.s32 %s1671_s21, %s1730_s24  ;;  %p145_p0 = scmp.ne.s32.totalorder %s1667_s20, %s1663_s19 }
   0x6   : > { %p133_p1 = scmp.eq.s32.totalorder %s132_s26, 0  ;;  %p146_p2 = scmp.eq.s32.totalorder %s1726_s22, 1 }
   0x7   : > { %p151_p3 = scmp.ne.s32.totalorder %s1663_s19, %s1659_s18  ;;  %p152_p4 = scmp.eq.s32.totalorder %s1389_s23, 1 }
   0x8   : > { %s1741_s27 = scalar_select %p133_p1, %s1667_s20, %s135_s25  }
   0x9   : > { %p1743_p5 = por %p146_p2, %p145_p0  ;;  %p1747_p6 = por %p152_p4, %p151_p3 }
   0xa   : > { %p1392_p7 = scmp.ge.s32.totalorder %s1671_s21, 1  ;;  %p191_p8 = scmp.lt.s32.totalorder %s1671_s21, 3 }
   0xc   : > { %p192_p9 = pnand %p1392_p7, %p191_p8 }
   0xd   : > { %s1394_s30 = sshll.u32 (!%p192_p9), %s1726_s22, 5  ;;  %s216_s16 = sand.u32 (!%p192_p9), 1, %s1663_s19  }
   0xe   : > { %195 = sbr.rel (%p192_p9) target bundleno = 419 (0x1a3), region = 40  ;;  %p220_p10 = scmp.lt.s32.totalorder (!%p192_p9), %s1394_s30, 63 }
   0xf   : > { %s1393_s17 = sshll.u32 (!%p192_p9), %s216_s16, 9  ;;  %s1567_s25 = sshll.u32 (!%p192_p9), %s1726_s22, 9 }
  0x10   : > { %s1872_s23 = scalar_lea.vmem (!%p192_p9), [#allocation2], %s1393_s17  ;;  %s1311_s8 = scalar_lea.sflag (!%p192_p9), [#allocation3], %s216_s16 }
  0x11   : > { %s1324_s22 = sshll.u32 (!%p192_p9), %s1872_s23, 4  ;;  %s1629_s13 = scalar_lea.hbm (!%p192_p9), %s2388_s5, 1024  ;;  %s1325_s22 = int_to_ptr.vmem [resolvable:$true] %s1324_s22 }
  0x13   : > { %v1462_v0 = vld [vmem:[%s2384_s1] sm:$0xf]  ;;  %v1564_v1 = vld [vmem:[%s2384_s1 + $0xc] sm:$0xf0]  ;;  %v1562_v2 = vld [vmem:[%s2384_s1 + $0x4] sm:$0xf] }
  0x14   : > { %v1463_v3 = vor.u32 %v1564_v1, %v1462_v0  ;;  %v1464_v4 = vld [vmem:[%s2384_s1 + $0x10] sm:$0xf0]  ;;  %v1470_v5 = vld [vmem:[%s2384_s1 + $0x8] sm:$0xf]  ;;  %v1565_v6 = vld [vmem:[%s2384_s1 + $0x14] sm:$0xf0] }
  0x15   : > { %v1467_v7 = vor.u32 %v1562_v2, %v1464_v4  ;;  %v1471_v8 = vor.u32 %v1565_v6, %v1470_v5  ;;  %v1563_v9 = vld [vmem:[%s2384_s1 + $0xc] sm:$0xf]  ;;  %v1472_v10 = vld [vmem:[%s2384_s1 + $0x18] sm:$0xf0]  ;;  %s2396_s30 = smov (!%p220_p10, %s1394_s30), 63  ;;  %vm363_vm0 = vcmask 130048  }
  0x16   : > { %419 = vmatpush.bf16.msra.mxu0 %v1463_v3  ;;  %v1475_v11 = vor.u32 %v1563_v9, %v1472_v10  ;;  %s1395_s6 = sshll.u32 %s2396_s30, 2  ;;  %v768_v20 = vld [vmem:[%s2385_s2] sm:$0xf] }
  0x17   : > { %508 = vmatpush.bf16.msra.mxu1 %v1467_v7  ;;  %597 = vmatpush.bf16.msra.mxu2 %v1471_v8  ;;  %s1781_s9 = scalar_lea.vmem %s2383_s0, %s1395_s6  ;;  %v906_v21 = vld [vmem:[%s2386_s3] sm:$0xf]  ;;  %v1829_v22 = vperm.slane %v768_v20, 0  ;;  %v1831_v23 = vperm.slane %v768_v20, 1  ;;  %v1856_v36 = vperm.slane %v768_v20, 2  ;;  %v1858_v37 = vperm.slane %v768_v20, 3  ;;  %s1323_s6 = scalar_lea.hbm %s2388_s5, %s1567_s25 }
  0x18   : > { %686 = vmatpush.bf16.msra.mxu3 %v1475_v11  ;;  %v1546_v12 = vld [vmem:[%s1781_s9] sm:$0xff]  ;;  %v1547_v13 = vld [vmem:[%s1781_s9 + $0x8] sm:$0xff]  ;;  %v1548_v14 = vld [vmem:[%s1781_s9 + $0x10] sm:$0xff]  ;;  %v1836_v25 = vperm.slane %v906_v21, 0  ;;  %v1838_v26 = vperm.slane %v906_v21, 1  ;;  %v1862_v40 = vperm.slane %v906_v21, 2 }
  0x19   : > { %1476 = vmatmul.msk.bf16.vlgmr.msra.gmra.mxu0 %vm363_vm0, %v1546_v12  ;;  %v1549_v15 = vld [vmem:[%s1781_s9 + $0x18] sm:$0xff]  ;;  %v1550_v16 = vld [vmem:[%s1781_s9 + $0x20] sm:$0xff]  ;;  %v1551_v17 = vld [vmem:[%s1781_s9 + $0x28] sm:$0xff]  ;;  %v1864_v41 = vperm.slane %v906_v21, 3  ;;  %s1326_s7 = sshll.u32 %s1323_s6, 4  ;;  %s1327_s7 = int_to_ptr.hbm [resolvable:$true] %s1326_s7 }
  0x1a   : > { %1492 = vmatmul.msk.bf16.vlgmr.msra.gmra.mxu1 %vm363_vm0, %v1546_v12  ;;  %1508 = vmatmul.msk.bf16.vlgmr.msra.gmra.mxu2 %vm363_vm0, %v1546_v12  ;;  %v1552_v18 = vld [vmem:[%s1781_s9 + $0x30] sm:$0xff]  ;;  %v1553_v19 = vld [vmem:[%s1781_s9 + $0x38] sm:$0xff]  ;;  %v1044_v24 = vld [vmem:[%s2387_s4] sm:$0xf] }
  0x1b   : > { %1524 = vmatmul.msk.bf16.vlgmr.msra.gmra.mxu3 %vm363_vm0, %v1546_v12  ;;  %v1554_v27 = vld [vmem:[%s1781_s9 + $0x40] sm:$0xff]  ;;  %v1843_v31 = vperm.slane %v1044_v24, 0  ;;  %v1846_v33 = vperm.slane %v1044_v24, 1  ;;  %v1867_v46 = vperm.slane %v1044_v24, 2  ;;  %v1870_v48 = vperm.slane %v1044_v24, 3  ;;  %v1555_v1 = vld [vmem:[%s1781_s9 + $0x48] sm:$0xff] }
  0x29   : > { %1477 = vmatmul.msk.bf16.gmra.mxu0 %vm363_vm0, %v1547_v13 }
  0x2a   : > { %1493 = vmatmul.msk.bf16.gmra.mxu1 %vm363_vm0, %v1547_v13  ;;  %1509 = vmatmul.msk.bf16.gmra.mxu2 %vm363_vm0, %v1547_v13 }
  0x2b   : > { %1525 = vmatmul.msk.bf16.gmra.mxu3 %vm363_vm0, %v1547_v13 }
  0x39   : > { %1478 = vmatmul.msk.bf16.gmra.mxu0 %vm363_vm0, %v1548_v14 }
  0x3a   : > { %1494 = vmatmul.msk.bf16.gmra.mxu1 %vm363_vm0, %v1548_v14  ;;  %1510 = vmatmul.msk.bf16.gmra.mxu2 %vm363_vm0, %v1548_v14 }
  0x3b   : > { %1526 = vmatmul.msk.bf16.gmra.mxu3 %vm363_vm0, %v1548_v14 }
  0x49   : > { %1479 = vmatmul.msk.bf16.gmra.mxu0 %vm363_vm0, %v1549_v15 }
  0x4a   : > { %1495 = vmatmul.msk.bf16.gmra.mxu1 %vm363_vm0, %v1549_v15  ;;  %1511 = vmatmul.msk.bf16.gmra.mxu2 %vm363_vm0, %v1549_v15 }
  0x4b   : > { %1527 = vmatmul.msk.bf16.gmra.mxu3 %vm363_vm0, %v1549_v15 }
  0x59   : > { %1480 = vmatmul.msk.bf16.gmra.mxu0 %vm363_vm0, %v1550_v16 }
  0x5a   : > { %1496 = vmatmul.msk.bf16.gmra.mxu1 %vm363_vm0, %v1550_v16  ;;  %1512 = vmatmul.msk.bf16.gmra.mxu2 %vm363_vm0, %v1550_v16 }
  0x5b   : > { %1528 = vmatmul.msk.bf16.gmra.mxu3 %vm363_vm0, %v1550_v16 }
  0x69   : > { %1481 = vmatmul.msk.bf16.gmra.mxu0 %vm363_vm0, %v1551_v17 }
  0x6a   : > { %1497 = vmatmul.msk.bf16.gmra.mxu1 %vm363_vm0, %v1551_v17  ;;  %1513 = vmatmul.msk.bf16.gmra.mxu2 %vm363_vm0, %v1551_v17 }
  0x6b   : > { %1529 = vmatmul.msk.bf16.gmra.mxu3 %vm363_vm0, %v1551_v17 }
  0x79   : > { %1482 = vmatmul.msk.bf16.gmra.mxu0 %vm363_vm0, %v1552_v18 }
  0x7a   : > { %1498 = vmatmul.msk.bf16.gmra.mxu1 %vm363_vm0, %v1552_v18  ;;  %1514 = vmatmul.msk.bf16.gmra.mxu2 %vm363_vm0, %v1552_v18 }
  0x7b   : > { %1530 = vmatmul.msk.bf16.gmra.mxu3 %vm363_vm0, %v1552_v18 }
  0x89   : > { %1483 = vmatmul.msk.bf16.gmra.mxu0 %vm363_vm0, %v1553_v19 }
  0x8a   : > { %1499 = vmatmul.msk.bf16.gmra.mxu1 %vm363_vm0, %v1553_v19  ;;  %1515 = vmatmul.msk.bf16.gmra.mxu2 %vm363_vm0, %v1553_v19 }
  0x8b   : > { %1531 = vmatmul.msk.bf16.gmra.mxu3 %vm363_vm0, %v1553_v19 }
  0x96   : > { %v421_v28 = vpop.f32.mrf.mxu0 }
  0x97   : > { %v510_v29 = vpop.f32.mrf.mxu1  ;;  %v778_v30 = vmul.f32 %v1829_v22, %v421_v28 }
  0x98   : > { %v779_v32 = vmul.f32 %v1831_v23, %v510_v29 }
  0x99   : > { %v916_v34 = vadd.f32 %v1836_v25, %v778_v30  ;;  %1484 = vmatmul.msk.bf16.gmra.mxu0 %vm363_vm0, %v1554_v27 }
  0x9a   : > { %v917_v35 = vadd.f32 %v1838_v26, %v779_v32  ;;  %1500 = vmatmul.msk.bf16.gmra.mxu1 %vm363_vm0, %v1554_v27  ;;  %1516 = vmatmul.msk.bf16.gmra.mxu2 %vm363_vm0, %v1554_v27 }
  0x9b   : > { %1532 = vmatmul.msk.bf16.gmra.mxu3 %vm363_vm0, %v1554_v27  ;;  %v1054_v38 = vmax.f32 %v916_v34, %v1843_v31 }
  0x9c   : > { %v1055_v39 = vmax.f32 %v917_v35, %v1846_v33 }
  0x9d   : > { %v599_v43 = vpop.f32.mrf.mxu2 }
  0x9e   : > { %v1182_v42 = vpack.c.bf16 %v1055_v39, %v1054_v38  ;;  %v688_v44 = vpop.f32.mrf.mxu3  ;;  %v780_v45 = vmul.f32 %v1856_v36, %v599_v43  ;;  %v423_v49 = vpop.f32.mrf.mxu0 }
  0x9f   : > { %v781_v47 = vmul.f32 %v1858_v37, %v688_v44  ;;  %v512_v50 = vpop.f32.mrf.mxu1  ;;  %v782_v51 = vmul.f32 %v1829_v22, %v423_v49 }
  0xa0   : > { %1246 = vst [vmem:[%s1872_s23] sm:$0xff] %v1182_v42  ;;  %v783_v52 = vmul.f32 %v1831_v23, %v512_v50  ;;  %v918_v53 = vadd.f32 %v1862_v40, %v780_v45  ;;  %v1556_v50 = vld [vmem:[%s1781_s9 + $0x50] sm:$0xff] }
  0xa1   : > { %v919_v54 = vadd.f32 %v1864_v41, %v781_v47  ;;  %v920_v55 = vadd.f32 %v1836_v25, %v782_v51 }
  0xa2   : > { %v921_v56 = vadd.f32 %v1838_v26, %v783_v52  ;;  %v1056_v57 = vmax.f32 %v918_v53, %v1867_v46 }
  0xa3   : > { %v1057_v58 = vmax.f32 %v919_v54, %v1870_v48  ;;  %v1058_v59 = vmax.f32 %v920_v55, %v1843_v31 }
  0xa4   : > { %v1059_v60 = vmax.f32 %v921_v56, %v1846_v33 }
  0xa5   : > { %v1183_v61 = vpack.c.bf16 %v1057_v58, %v1056_v57  ;;  %v601_v63 = vpop.f32.mrf.mxu2 }
  0xa6   : > { %v1184_v62 = vpack.c.bf16 %v1059_v60, %v1058_v59  ;;  %v690_v0 = vpop.f32.mrf.mxu3  ;;  %v784_v2 = vmul.f32 %v1856_v36, %v601_v63  ;;  %v426_v4 = vpop.f32.mrf.mxu0 }
  0xa7   : > { %1247 = vst [vmem:[%s1872_s23 + $0x8] sm:$0xff] %v1183_v61  ;;  %v785_v3 = vmul.f32 %v1858_v37, %v690_v0  ;;  %v515_v5 = vpop.f32.mrf.mxu1  ;;  %v786_v6 = vmul.f32 %v1829_v22, %v426_v4 }
  0xa8   : > { %1248 = vst [vmem:[%s1872_s23 + $0x10] sm:$0xff] %v1184_v62  ;;  %v787_v7 = vmul.f32 %v1831_v23, %v515_v5  ;;  %v922_v8 = vadd.f32 %v1862_v40, %v784_v2 }
  0xa9   : > { %v923_v9 = vadd.f32 %v1864_v41, %v785_v3  ;;  %v924_v10 = vadd.f32 %v1836_v25, %v786_v6  ;;  %1485 = vmatmul.msk.bf16.gmra.mxu0 %vm363_vm0, %v1555_v1 }
  0xaa   : > { %v925_v11 = vadd.f32 %v1838_v26, %v787_v7  ;;  %1501 = vmatmul.msk.bf16.gmra.mxu1 %vm363_vm0, %v1555_v1  ;;  %v1060_v12 = vmax.f32 %v922_v8, %v1867_v46  ;;  %1517 = vmatmul.msk.bf16.gmra.mxu2 %vm363_vm0, %v1555_v1 }
  0xab   : > { %v1061_v13 = vmax.f32 %v923_v9, %v1870_v48  ;;  %1533 = vmatmul.msk.bf16.gmra.mxu3 %vm363_vm0, %v1555_v1  ;;  %v1062_v14 = vmax.f32 %v924_v10, %v1843_v31 }
  0xac   : > { %v1063_v15 = vmax.f32 %v925_v11, %v1846_v33 }
  0xad   : > { %v1185_v16 = vpack.c.bf16 %v1061_v13, %v1060_v12  ;;  %v604_v18 = vpop.f32.mrf.mxu2 }
  0xae   : > { %v1186_v17 = vpack.c.bf16 %v1063_v15, %v1062_v14  ;;  %v693_v19 = vpop.f32.mrf.mxu3  ;;  %v788_v20 = vmul.f32 %v1856_v36, %v604_v18  ;;  %v428_v24 = vpop.f32.mrf.mxu0 }
  0xaf   : > { %1249 = vst [vmem:[%s1872_s23 + $0x18] sm:$0xff] %v1185_v16  ;;  %v789_v21 = vmul.f32 %v1858_v37, %v693_v19  ;;  %v517_v27 = vpop.f32.mrf.mxu1  ;;  %v790_v28 = vmul.f32 %v1829_v22, %v428_v24 }
  0xb0   : > { %1250 = vst [vmem:[%s1872_s23 + $0x20] sm:$0xff] %v1186_v17  ;;  %v791_v29 = vmul.f32 %v1831_v23, %v517_v27  ;;  %v926_v30 = vadd.f32 %v1862_v40, %v788_v20  ;;  %v1557_v27 = vld [vmem:[%s1781_s9 + $0x58] sm:$0xff] }
  0xb1   : > { %v927_v32 = vadd.f32 %v1864_v41, %v789_v21  ;;  %v928_v34 = vadd.f32 %v1836_v25, %v790_v28 }
  0xb2   : > { %v929_v35 = vadd.f32 %v1838_v26, %v791_v29  ;;  %v1064_v38 = vmax.f32 %v926_v30, %v1867_v46 }
  0xb3   : > { %v1065_v39 = vmax.f32 %v927_v32, %v1870_v48  ;;  %v1066_v42 = vmax.f32 %v928_v34, %v1843_v31 }
  0xb4   : > { %v1067_v43 = vmax.f32 %v929_v35, %v1846_v33 }
  0xb5   : > { %v1187_v44 = vpack.c.bf16 %v1065_v39, %v1064_v38  ;;  %v606_v47 = vpop.f32.mrf.mxu2 }
  0xb6   : > { %v1188_v45 = vpack.c.bf16 %v1067_v43, %v1066_v42  ;;  %v695_v49 = vpop.f32.mrf.mxu3  ;;  %v792_v51 = vmul.f32 %v1856_v36, %v606_v47  ;;  %v431_v53 = vpop.f32.mrf.mxu0 }
  0xb7   : > { %1251 = vst [vmem:[%s1872_s23 + $0x28] sm:$0xff] %v1187_v44  ;;  %v793_v52 = vmul.f32 %v1858_v37, %v695_v49  ;;  %v520_v54 = vpop.f32.mrf.mxu1  ;;  %v794_v55 = vmul.f32 %v1829_v22, %v431_v53 }
  0xb8   : > { %1252 = vst [vmem:[%s1872_s23 + $0x30] sm:$0xff] %v1188_v45  ;;  %v795_v56 = vmul.f32 %v1831_v23, %v520_v54  ;;  %v930_v57 = vadd.f32 %v1862_v40, %v792_v51 }
  0xb9   : > { %v931_v58 = vadd.f32 %v1864_v41, %v793_v52  ;;  %v932_v59 = vadd.f32 %v1836_v25, %v794_v55  ;;  %1486 = vmatmul.msk.bf16.gmra.mxu0 %vm363_vm0, %v1556_v50 }
  0xba   : > { %v933_v60 = vadd.f32 %v1838_v26, %v795_v56  ;;  %1502 = vmatmul.msk.bf16.gmra.mxu1 %vm363_vm0, %v1556_v50  ;;  %v1068_v61 = vmax.f32 %v930_v57, %v1867_v46  ;;  %1518 = vmatmul.msk.bf16.gmra.mxu2 %vm363_vm0, %v1556_v50 }
  0xbb   : > { %v1069_v62 = vmax.f32 %v931_v58, %v1870_v48  ;;  %1534 = vmatmul.msk.bf16.gmra.mxu3 %vm363_vm0, %v1556_v50  ;;  %v1070_v63 = vmax.f32 %v932_v59, %v1843_v31 }
  0xbc   : > { %v1071_v0 = vmax.f32 %v933_v60, %v1846_v33 }
  0xbd   : > { %v1189_v1 = vpack.c.bf16 %v1069_v62, %v1068_v61  ;;  %v609_v3 = vpop.f32.mrf.mxu2 }
  0xbe   : > { %v1190_v2 = vpack.c.bf16 %v1071_v0, %v1070_v63  ;;  %v698_v4 = vpop.f32.mrf.mxu3  ;;  %v796_v5 = vmul.f32 %v1856_v36, %v609_v3  ;;  %v433_v7 = vpop.f32.mrf.mxu0 }
  0xbf   : > { %1253 = vst [vmem:[%s1872_s23 + $0x38] sm:$0xff] %v1189_v1  ;;  %v797_v6 = vmul.f32 %v1858_v37, %v698_v4  ;;  %v522_v8 = vpop.f32.mrf.mxu1  ;;  %v798_v9 = vmul.f32 %v1829_v22, %v433_v7 }
  0xc0   : > { %1254 = vst [vmem:[%s1872_s23 + $0x40] sm:$0xff] %v1190_v2  ;;  %v799_v10 = vmul.f32 %v1831_v23, %v522_v8  ;;  %v934_v11 = vadd.f32 %v1862_v40, %v796_v5  ;;  %v1558_v8 = vld [vmem:[%s1781_s9 + $0x60] sm:$0xff] }
  0xc1   : > { %v935_v12 = vadd.f32 %v1864_v41, %v797_v6  ;;  %v936_v13 = vadd.f32 %v1836_v25, %v798_v9 }
  0xc2   : > { %v937_v14 = vadd.f32 %v1838_v26, %v799_v10  ;;  %v1072_v15 = vmax.f32 %v934_v11, %v1867_v46 }
  0xc3   : > { %v1073_v16 = vmax.f32 %v935_v12, %v1870_v48  ;;  %v1074_v17 = vmax.f32 %v936_v13, %v1843_v31 }
  0xc4   : > { %v1075_v18 = vmax.f32 %v937_v14, %v1846_v33 }
  0xc5   : > { %v1191_v19 = vpack.c.bf16 %v1073_v16, %v1072_v15  ;;  %v611_v21 = vpop.f32.mrf.mxu2 }
  0xc6   : > { %v1192_v20 = vpack.c.bf16 %v1075_v18, %v1074_v17  ;;  %v700_v24 = vpop.f32.mrf.mxu3  ;;  %v800_v28 = vmul.f32 %v1856_v36, %v611_v21  ;;  %v436_v30 = vpop.f32.mrf.mxu0 }
  0xc7   : > { %1255 = vst [vmem:[%s1872_s23 + $0x48] sm:$0xff] %v1191_v19  ;;  %v801_v29 = vmul.f32 %v1858_v37, %v700_v24  ;;  %v525_v32 = vpop.f32.mrf.mxu1  ;;  %v802_v34 = vmul.f32 %v1829_v22, %v436_v30 }
  0xc8   : > { %1256 = vst [vmem:[%s1872_s23 + $0x50] sm:$0xff] %v1192_v20  ;;  %v803_v35 = vmul.f32 %v1831_v23, %v525_v32  ;;  %v938_v38 = vadd.f32 %v1862_v40, %v800_v28 }
  0xc9   : > { %v939_v39 = vadd.f32 %v1864_v41, %v801_v29  ;;  %v940_v42 = vadd.f32 %v1836_v25, %v802_v34  ;;  %1487 = vmatmul.msk.bf16.gmra.mxu0 %vm363_vm0, %v1557_v27 }
  0xca   : > { %v941_v43 = vadd.f32 %v1838_v26, %v803_v35  ;;  %1503 = vmatmul.msk.bf16.gmra.mxu1 %vm363_vm0, %v1557_v27  ;;  %v1076_v44 = vmax.f32 %v938_v38, %v1867_v46  ;;  %1519 = vmatmul.msk.bf16.gmra.mxu2 %vm363_vm0, %v1557_v27 }
  0xcb   : > { %v1077_v45 = vmax.f32 %v939_v39, %v1870_v48  ;;  %1535 = vmatmul.msk.bf16.gmra.mxu3 %vm363_vm0, %v1557_v27  ;;  %v1078_v47 = vmax.f32 %v940_v42, %v1843_v31 }
  0xcc   : > { %v1079_v49 = vmax.f32 %v941_v43, %v1846_v33 }
  0xcd   : > { %v1193_v50 = vpack.c.bf16 %v1077_v45, %v1076_v44  ;;  %v614_v52 = vpop.f32.mrf.mxu2 }
  0xce   : > { %v1194_v51 = vpack.c.bf16 %v1079_v49, %v1078_v47  ;;  %v703_v53 = vpop.f32.mrf.mxu3  ;;  %v804_v54 = vmul.f32 %v1856_v36, %v614_v52  ;;  %v438_v56 = vpop.f32.mrf.mxu0 }
  0xcf   : > { %1257 = vst [vmem:[%s1872_s23 + $0x58] sm:$0xff] %v1193_v50  ;;  %v805_v55 = vmul.f32 %v1858_v37, %v703_v53  ;;  %v527_v57 = vpop.f32.mrf.mxu1  ;;  %v806_v58 = vmul.f32 %v1829_v22, %v438_v56 }
  0xd0   : > { %1258 = vst [vmem:[%s1872_s23 + $0x60] sm:$0xff] %v1194_v51  ;;  %v807_v59 = vmul.f32 %v1831_v23, %v527_v57  ;;  %v942_v60 = vadd.f32 %v1862_v40, %v804_v54  ;;  %v1559_v57 = vld [vmem:[%s1781_s9 + $0x68] sm:$0xff] }
  0xd1   : > { %v943_v61 = vadd.f32 %v1864_v41, %v805_v55  ;;  %v944_v62 = vadd.f32 %v1836_v25, %v806_v58 }
  0xd2   : > { %v945_v63 = vadd.f32 %v1838_v26, %v807_v59  ;;  %v1080_v0 = vmax.f32 %v942_v60, %v1867_v46 }
  0xd3   : > { %v1081_v1 = vmax.f32 %v943_v61, %v1870_v48  ;;  %v1082_v2 = vmax.f32 %v944_v62, %v1843_v31 }
  0xd4   : > { %v1083_v3 = vmax.f32 %v945_v63, %v1846_v33 }
  0xd5   : > { %v1195_v4 = vpack.c.bf16 %v1081_v1, %v1080_v0  ;;  %v616_v6 = vpop.f32.mrf.mxu2 }
  0xd6   : > { %v1196_v5 = vpack.c.bf16 %v1083_v3, %v1082_v2  ;;  %v705_v7 = vpop.f32.mrf.mxu3  ;;  %v808_v9 = vmul.f32 %v1856_v36, %v616_v6  ;;  %v441_v11 = vpop.f32.mrf.mxu0 }
  0xd7   : > { %1259 = vst [vmem:[%s1872_s23 + $0x68] sm:$0xff] %v1195_v4  ;;  %v809_v10 = vmul.f32 %v1858_v37, %v705_v7  ;;  %v530_v12 = vpop.f32.mrf.mxu1  ;;  %v810_v13 = vmul.f32 %v1829_v22, %v441_v11 }
  0xd8   : > { %1260 = vst [vmem:[%s1872_s23 + $0x70] sm:$0xff] %v1196_v5  ;;  %v811_v14 = vmul.f32 %v1831_v23, %v530_v12  ;;  %v946_v15 = vadd.f32 %v1862_v40, %v808_v9 }
  0xd9   : > { %v947_v16 = vadd.f32 %v1864_v41, %v809_v10  ;;  %v948_v17 = vadd.f32 %v1836_v25, %v810_v13  ;;  %1488 = vmatmul.msk.bf16.gmra.mxu0 %vm363_vm0, %v1558_v8 }
  0xda   : > { %v949_v18 = vadd.f32 %v1838_v26, %v811_v14  ;;  %1504 = vmatmul.msk.bf16.gmra.mxu1 %vm363_vm0, %v1558_v8  ;;  %v1084_v19 = vmax.f32 %v946_v15, %v1867_v46  ;;  %1520 = vmatmul.msk.bf16.gmra.mxu2 %vm363_vm0, %v1558_v8 }
  0xdb   : > { %v1085_v20 = vmax.f32 %v947_v16, %v1870_v48  ;;  %1536 = vmatmul.msk.bf16.gmra.mxu3 %vm363_vm0, %v1558_v8  ;;  %v1086_v21 = vmax.f32 %v948_v17, %v1843_v31 }
  0xdc   : > { %v1087_v24 = vmax.f32 %v949_v18, %v1846_v33 }
  0xdd   : > { %v1197_v27 = vpack.c.bf16 %v1085_v20, %v1084_v19  ;;  %v619_v29 = vpop.f32.mrf.mxu2 }
  0xde   : > { %v1198_v28 = vpack.c.bf16 %v1087_v24, %v1086_v21  ;;  %v708_v30 = vpop.f32.mrf.mxu3  ;;  %v812_v32 = vmul.f32 %v1856_v36, %v619_v29  ;;  %v443_v35 = vpop.f32.mrf.mxu0 }
  0xdf   : > { %1261 = vst [vmem:[%s1872_s23 + $0x78] sm:$0xff] %v1197_v27  ;;  %v813_v34 = vmul.f32 %v1858_v37, %v708_v30  ;;  %v532_v38 = vpop.f32.mrf.mxu1  ;;  %v814_v39 = vmul.f32 %v1829_v22, %v443_v35 }
  0xe0   : > { %1262 = vst [vmem:[%s1872_s23 + $0x80] sm:$0xff] %v1198_v28  ;;  %v815_v42 = vmul.f32 %v1831_v23, %v532_v38  ;;  %v950_v43 = vadd.f32 %v1862_v40, %v812_v32  ;;  %v1560_v38 = vld [vmem:[%s1781_s9 + $0x70] sm:$0xff] }
  0xe1   : > { %v951_v44 = vadd.f32 %v1864_v41, %v813_v34  ;;  %v952_v45 = vadd.f32 %v1836_v25, %v814_v39 }
  0xe2   : > { %v953_v47 = vadd.f32 %v1838_v26, %v815_v42  ;;  %v1088_v49 = vmax.f32 %v950_v43, %v1867_v46 }
  0xe3   : > { %v1089_v50 = vmax.f32 %v951_v44, %v1870_v48  ;;  %v1090_v51 = vmax.f32 %v952_v45, %v1843_v31 }
  0xe4   : > { %v1091_v52 = vmax.f32 %v953_v47, %v1846_v33 }
  0xe5   : > { %v1199_v53 = vpack.c.bf16 %v1089_v50, %v1088_v49  ;;  %v621_v55 = vpop.f32.mrf.mxu2 }
  0xe6   : > { %v1200_v54 = vpack.c.bf16 %v1091_v52, %v1090_v51  ;;  %v710_v56 = vpop.f32.mrf.mxu3  ;;  %v816_v58 = vmul.f32 %v1856_v36, %v621_v55  ;;  %v446_v60 = vpop.f32.mrf.mxu0 }
  0xe7   : > { %1263 = vst [vmem:[%s1872_s23 + $0x88] sm:$0xff] %v1199_v53  ;;  %v817_v59 = vmul.f32 %v1858_v37, %v710_v56  ;;  %v535_v61 = vpop.f32.mrf.mxu1  ;;  %v818_v62 = vmul.f32 %v1829_v22, %v446_v60 }
  0xe8   : > { %1264 = vst [vmem:[%s1872_s23 + $0x90] sm:$0xff] %v1200_v54  ;;  %v819_v63 = vmul.f32 %v1831_v23, %v535_v61  ;;  %v954_v0 = vadd.f32 %v1862_v40, %v816_v58 }
  0xe9   : > { %v955_v1 = vadd.f32 %v1864_v41, %v817_v59  ;;  %v956_v2 = vadd.f32 %v1836_v25, %v818_v62  ;;  %1489 = vmatmul.msk.bf16.gmra.mxu0 %vm363_vm0, %v1559_v57 }
  0xea   : > { %v957_v3 = vadd.f32 %v1838_v26, %v819_v63  ;;  %1505 = vmatmul.msk.bf16.gmra.mxu1 %vm363_vm0, %v1559_v57  ;;  %v1092_v4 = vmax.f32 %v954_v0, %v1867_v46  ;;  %1521 = vmatmul.msk.bf16.gmra.mxu2 %vm363_vm0, %v1559_v57 }
  0xeb   : > { %v1093_v5 = vmax.f32 %v955_v1, %v1870_v48  ;;  %1537 = vmatmul.msk.bf16.gmra.mxu3 %vm363_vm0, %v1559_v57  ;;  %v1094_v6 = vmax.f32 %v956_v2, %v1843_v31 }
  0xec   : > { %v1095_v7 = vmax.f32 %v957_v3, %v1846_v33 }
  0xed   : > { %v1201_v8 = vpack.c.bf16 %v1093_v5, %v1092_v4  ;;  %v624_v10 = vpop.f32.mrf.mxu2 }
  0xee   : > { %v1202_v9 = vpack.c.bf16 %v1095_v7, %v1094_v6  ;;  %v713_v11 = vpop.f32.mrf.mxu3  ;;  %v820_v12 = vmul.f32 %v1856_v36, %v624_v10  ;;  %v448_v14 = vpop.f32.mrf.mxu0 }
  0xef   : > { %1265 = vst [vmem:[%s1872_s23 + $0x98] sm:$0xff] %v1201_v8  ;;  %v821_v13 = vmul.f32 %v1858_v37, %v713_v11  ;;  %v537_v15 = vpop.f32.mrf.mxu1  ;;  %v822_v16 = vmul.f32 %v1829_v22, %v448_v14 }
  0xf0   : > { %1266 = vst [vmem:[%s1872_s23 + $0xa0] sm:$0xff] %v1202_v9  ;;  %v823_v17 = vmul.f32 %v1831_v23, %v537_v15  ;;  %v958_v18 = vadd.f32 %v1862_v40, %v820_v12  ;;  %v1561_v15 = vld [vmem:[%s1781_s9 + $0x78] sm:$0xff]  ;;  %s1623_s9 = sshra.s32 %s1327_s7, 4  ;;  %s1624_s9 = int_to_ptr.hbm [resolvable:$true] %s1623_s9 }
  0xf1   : > { %v959_v19 = vadd.f32 %v1864_v41, %v821_v13  ;;  %v960_v20 = vadd.f32 %v1836_v25, %v822_v16  ;;  %s1625_s10 = scalar_lea.hbm %s1624_s9, 512  ;;  %p1630_p0 = scmp.lt.s32.totalorder %s1624_s9, %s2388_s5 }
  0xf2   : > { %v961_v21 = vadd.f32 %v1838_v26, %v823_v17  ;;  %v1096_v24 = vmax.f32 %v958_v18, %v1867_v46  ;;  %p1626_p11 = scmp.ne.s32.totalorder %s1624_s9, %s1625_s10  ;;  %p1631_p1 = scmp.lt.s32.totalorder %s1629_s13, %s1625_s10 }
  0xf3   : > { %v1097_v27 = vmax.f32 %v959_v19, %v1870_v48  ;;  %v1098_v28 = vmax.f32 %v960_v20, %v1843_v31 }
  0xf4   : > { %v1099_v29 = vmax.f32 %v961_v21, %v1846_v33  ;;  %p1627_p12 = pnand %p1626_p11, %p1743_p5  ;;  %p1632_p2 = por %p1631_p1, %p1630_p0 }
  0xf5   : > { %v1203_v30 = vpack.c.bf16 %v1097_v27, %v1096_v24  ;;  %v626_v34 = vpop.f32.mrf.mxu2 }
  0xf6   : > { %v1204_v32 = vpack.c.bf16 %v1099_v29, %v1098_v28  ;;  %v715_v35 = vpop.f32.mrf.mxu3  ;;  %v824_v39 = vmul.f32 %v1856_v36, %v626_v34  ;;  %v451_v43 = vpop.f32.mrf.mxu0  ;;  %p1628_p13 = pneg %p1627_p12 }
  0xf7   : > { %1267 = vst [vmem:[%s1872_s23 + $0xa8] sm:$0xff] %v1203_v30  ;;  %v825_v42 = vmul.f32 %v1858_v37, %v715_v35  ;;  %v540_v44 = vpop.f32.mrf.mxu1  ;;  %v826_v45 = vmul.f32 %v1829_v22, %v451_v43 }
  0xf8   : > { %1268 = vst [vmem:[%s1872_s23 + $0xb0] sm:$0xff] %v1204_v32  ;;  %v827_v47 = vmul.f32 %v1831_v23, %v540_v44  ;;  %v962_v49 = vadd.f32 %v1862_v40, %v824_v39  ;;  %p1633_p3 = pnand %p1632_p2, %p1628_p13 }
  0xf9   : > { %v963_v50 = vadd.f32 %v1864_v41, %v825_v42  ;;  %v964_v51 = vadd.f32 %v1836_v25, %v826_v45  ;;  %1490 = vmatmul.msk.bf16.gmra.mxu0 %vm363_vm0, %v1560_v38 }
  0xfa   : > { %v965_v52 = vadd.f32 %v1838_v26, %v827_v47  ;;  %1506 = vmatmul.msk.bf16.gmra.mxu1 %vm363_vm0, %v1560_v38  ;;  %v1100_v53 = vmax.f32 %v962_v49, %v1867_v46  ;;  %1522 = vmatmul.msk.bf16.gmra.mxu2 %vm363_vm0, %v1560_v38 }
  0xfb   : > { %v1101_v54 = vmax.f32 %v963_v50, %v1870_v48  ;;  %1538 = vmatmul.msk.bf16.gmra.mxu3 %vm363_vm0, %v1560_v38  ;;  %v1102_v55 = vmax.f32 %v964_v51, %v1843_v31 }
  0xfc   : > { %v1103_v56 = vmax.f32 %v965_v52, %v1846_v33 }
  0xfd   : > { %v1205_v57 = vpack.c.bf16 %v1101_v54, %v1100_v53  ;;  %v629_v59 = vpop.f32.mrf.mxu2 }
  0xfe   : > { %v1206_v58 = vpack.c.bf16 %v1103_v56, %v1102_v55  ;;  %v718_v60 = vpop.f32.mrf.mxu3  ;;  %v828_v61 = vmul.f32 %v1856_v36, %v629_v59  ;;  %v453_v63 = vpop.f32.mrf.mxu0 }
  0xff   : > { %1269 = vst [vmem:[%s1872_s23 + $0xb8] sm:$0xff] %v1205_v57  ;;  %v829_v62 = vmul.f32 %v1858_v37, %v718_v60  ;;  %v542_v0 = vpop.f32.mrf.mxu1  ;;  %v830_v1 = vmul.f32 %v1829_v22, %v453_v63 }
 0x100   : > { %1270 = vst [vmem:[%s1872_s23 + $0xc0] sm:$0xff] %v1206_v58  ;;  %v831_v2 = vmul.f32 %v1831_v23, %v542_v0  ;;  %v966_v3 = vadd.f32 %v1862_v40, %v828_v61 }
 0x101   : > { %v967_v4 = vadd.f32 %v1864_v41, %v829_v62  ;;  %v968_v5 = vadd.f32 %v1836_v25, %v830_v1 }
 0x102   : > { %v969_v6 = vadd.f32 %v1838_v26, %v831_v2  ;;  %v1104_v7 = vmax.f32 %v966_v3, %v1867_v46 }
 0x103   : > { %v1105_v8 = vmax.f32 %v967_v4, %v1870_v48  ;;  %v1106_v9 = vmax.f32 %v968_v5, %v1843_v31 }
 0x104   : > { %v1107_v10 = vmax.f32 %v969_v6, %v1846_v33 }
 0x105   : > { %v1207_v11 = vpack.c.bf16 %v1105_v8, %v1104_v7  ;;  %v631_v13 = vpop.f32.mrf.mxu2 }
 0x106   : > { %v1208_v12 = vpack.c.bf16 %v1107_v10, %v1106_v9  ;;  %v720_v14 = vpop.f32.mrf.mxu3  ;;  %v832_v16 = vmul.f32 %v1856_v36, %v631_v13  ;;  %v456_v18 = vpop.f32.mrf.mxu0 }
 0x107   : > { %1271 = vst [vmem:[%s1872_s23 + $0xc8] sm:$0xff] %v1207_v11  ;;  %v833_v17 = vmul.f32 %v1858_v37, %v720_v14  ;;  %v545_v19 = vpop.f32.mrf.mxu1  ;;  %v834_v20 = vmul.f32 %v1829_v22, %v456_v18 }
 0x108   : > { %1272 = vst [vmem:[%s1872_s23 + $0xd0] sm:$0xff] %v1208_v12  ;;  %v835_v21 = vmul.f32 %v1831_v23, %v545_v19  ;;  %v970_v24 = vadd.f32 %v1862_v40, %v832_v16 }
 0x109   : > { %v971_v27 = vadd.f32 %v1864_v41, %v833_v17  ;;  %v972_v28 = vadd.f32 %v1836_v25, %v834_v20  ;;  %1491 = vmatmul.msk.bf16.gmra.mxu0 %vm363_vm0, %v1561_v15 }
 0x10a   : > { %v973_v29 = vadd.f32 %v1838_v26, %v835_v21  ;;  %1507 = vmatmul.msk.bf16.gmra.mxu1 %vm363_vm0, %v1561_v15  ;;  %v1108_v30 = vmax.f32 %v970_v24, %v1867_v46  ;;  %1523 = vmatmul.msk.bf16.gmra.mxu2 %vm363_vm0, %v1561_v15 }
 0x10b   : > { %v1109_v32 = vmax.f32 %v971_v27, %v1870_v48  ;;  %1539 = vmatmul.msk.bf16.gmra.mxu3 %vm363_vm0, %v1561_v15  ;;  %v1110_v34 = vmax.f32 %v972_v28, %v1843_v31 }
 0x10c   : > { %v1111_v35 = vmax.f32 %v973_v29, %v1846_v33 }
 0x10d   : > { %v1209_v38 = vpack.c.bf16 %v1109_v32, %v1108_v30  ;;  %v634_v42 = vpop.f32.mrf.mxu2 }
 0x10e   : > { %v1210_v39 = vpack.c.bf16 %v1111_v35, %v1110_v34  ;;  %v723_v43 = vpop.f32.mrf.mxu3  ;;  %v836_v44 = vmul.f32 %v1856_v36, %v634_v42  ;;  %v458_v47 = vpop.f32.mrf.mxu0 }
 0x10f   : > { %1273 = vst [vmem:[%s1872_s23 + $0xd8] sm:$0xff] %v1209_v38  ;;  %v837_v45 = vmul.f32 %v1858_v37, %v723_v43  ;;  %v547_v49 = vpop.f32.mrf.mxu1  ;;  %v838_v50 = vmul.f32 %v1829_v22, %v458_v47 }
 0x110   : > { %1274 = vst [vmem:[%s1872_s23 + $0xe0] sm:$0xff] %v1210_v39  ;;  %v839_v51 = vmul.f32 %v1831_v23, %v547_v49  ;;  %v974_v52 = vadd.f32 %v1862_v40, %v836_v44 }
 0x111   : > { %v975_v53 = vadd.f32 %v1864_v41, %v837_v45  ;;  %v976_v54 = vadd.f32 %v1836_v25, %v838_v50 }
 0x112   : > { %v977_v55 = vadd.f32 %v1838_v26, %v839_v51  ;;  %v1112_v56 = vmax.f32 %v974_v52, %v1867_v46 }
 0x113   : > { %v1113_v57 = vmax.f32 %v975_v53, %v1870_v48  ;;  %v1114_v58 = vmax.f32 %v976_v54, %v1843_v31 }
 0x114   : > { %v1115_v59 = vmax.f32 %v977_v55, %v1846_v33 }
 0x115   : > { %v1211_v60 = vpack.c.bf16 %v1113_v57, %v1112_v56  ;;  %v636_v62 = vpop.f32.mrf.mxu2 }
 0x116   : > { %v1212_v61 = vpack.c.bf16 %v1115_v59, %v1114_v58  ;;  %v725_v63 = vpop.f32.mrf.mxu3  ;;  %v840_v0 = vmul.f32 %v1856_v36, %v636_v62  ;;  %v461_v2 = vpop.f32.mrf.mxu0 }
 0x117   : > { %1275 = vst [vmem:[%s1872_s23 + $0xe8] sm:$0xff] %v1211_v60  ;;  %v841_v1 = vmul.f32 %v1858_v37, %v725_v63  ;;  %v550_v3 = vpop.f32.mrf.mxu1  ;;  %v842_v4 = vmul.f32 %v1829_v22, %v461_v2 }
 0x118   : > { %1276 = vst [vmem:[%s1872_s23 + $0xf0] sm:$0xff] %v1212_v61  ;;  %v843_v5 = vmul.f32 %v1831_v23, %v550_v3  ;;  %v978_v6 = vadd.f32 %v1862_v40, %v840_v0 }
 0x119   : > { %v979_v7 = vadd.f32 %v1864_v41, %v841_v1  ;;  %v980_v8 = vadd.f32 %v1836_v25, %v842_v4 }
 0x11a   : > { %v981_v9 = vadd.f32 %v1838_v26, %v843_v5  ;;  %v1116_v10 = vmax.f32 %v978_v6, %v1867_v46 }
 0x11b   : > { %v1117_v11 = vmax.f32 %v979_v7, %v1870_v48  ;;  %v1118_v12 = vmax.f32 %v980_v8, %v1843_v31 }
 0x11c   : > { %v1119_v13 = vmax.f32 %v981_v9, %v1846_v33 }
 0x11d   : > { %v1213_v14 = vpack.c.bf16 %v1117_v11, %v1116_v10  ;;  %v639_v16 = vpop.f32.mrf.mxu2 }
 0x11e   : > { %v1214_v15 = vpack.c.bf16 %v1119_v13, %v1118_v12  ;;  %v728_v17 = vpop.f32.mrf.mxu3  ;;  %v844_v18 = vmul.f32 %v1856_v36, %v639_v16  ;;  %v463_v20 = vpop.f32.mrf.mxu0 }
 0x11f   : > { %1277 = vst [vmem:[%s1872_s23 + $0xf8] sm:$0xff] %v1213_v14  ;;  %v845_v19 = vmul.f32 %v1858_v37, %v728_v17  ;;  %v552_v21 = vpop.f32.mrf.mxu1  ;;  %v846_v24 = vmul.f32 %v1829_v22, %v463_v20 }
 0x120   : > { %1278 = vst [vmem:[%s1872_s23 + $0x100] sm:$0xff] %v1214_v15  ;;  %v847_v27 = vmul.f32 %v1831_v23, %v552_v21  ;;  %v982_v28 = vadd.f32 %v1862_v40, %v844_v18 }
 0x121   : > { %v983_v29 = vadd.f32 %v1864_v41, %v845_v19  ;;  %v984_v30 = vadd.f32 %v1836_v25, %v846_v24 }
 0x122   : > { %v985_v32 = vadd.f32 %v1838_v26, %v847_v27  ;;  %v1120_v34 = vmax.f32 %v982_v28, %v1867_v46 }
 0x123   : > { %v1121_v35 = vmax.f32 %v983_v29, %v1870_v48  ;;  %v1122_v38 = vmax.f32 %v984_v30, %v1843_v31 }
 0x124   : > { %v1123_v39 = vmax.f32 %v985_v32, %v1846_v33 }
 0x125   : > { %v1215_v42 = vpack.c.bf16 %v1121_v35, %v1120_v34  ;;  %v641_v44 = vpop.f32.mrf.mxu2 }
 0x126   : > { %v1216_v43 = vpack.c.bf16 %v1123_v39, %v1122_v38  ;;  %v730_v45 = vpop.f32.mrf.mxu3  ;;  %v848_v47 = vmul.f32 %v1856_v36, %v641_v44  ;;  %v466_v50 = vpop.f32.mrf.mxu0 }
 0x127   : > { %1279 = vst [vmem:[%s1872_s23 + $0x108] sm:$0xff] %v1215_v42  ;;  %v849_v49 = vmul.f32 %v1858_v37, %v730_v45  ;;  %v555_v51 = vpop.f32.mrf.mxu1  ;;  %v850_v52 = vmul.f32 %v1829_v22, %v466_v50 }
 0x128   : > { %1280 = vst [vmem:[%s1872_s23 + $0x110] sm:$0xff] %v1216_v43  ;;  %v851_v53 = vmul.f32 %v1831_v23, %v555_v51  ;;  %v986_v54 = vadd.f32 %v1862_v40, %v848_v47 }
 0x129   : > { %v987_v55 = vadd.f32 %v1864_v41, %v849_v49  ;;  %v988_v56 = vadd.f32 %v1836_v25, %v850_v52 }
 0x12a   : > { %v989_v57 = vadd.f32 %v1838_v26, %v851_v53  ;;  %v1124_v58 = vmax.f32 %v986_v54, %v1867_v46 }
 0x12b   : > { %v1125_v59 = vmax.f32 %v987_v55, %v1870_v48  ;;  %v1126_v60 = vmax.f32 %v988_v56, %v1843_v31 }
 0x12c   : > { %v1127_v61 = vmax.f32 %v989_v57, %v1846_v33 }
 0x12d   : > { %v1217_v62 = vpack.c.bf16 %v1125_v59, %v1124_v58  ;;  %v644_v0 = vpop.f32.mrf.mxu2 }
 0x12e   : > { %v1218_v63 = vpack.c.bf16 %v1127_v61, %v1126_v60  ;;  %v733_v1 = vpop.f32.mrf.mxu3  ;;  %v852_v2 = vmul.f32 %v1856_v36, %v644_v0  ;;  %v468_v4 = vpop.f32.mrf.mxu0 }
 0x12f   : > { %1281 = vst [vmem:[%s1872_s23 + $0x118] sm:$0xff] %v1217_v62  ;;  %v853_v3 = vmul.f32 %v1858_v37, %v733_v1  ;;  %v557_v5 = vpop.f32.mrf.mxu1  ;;  %v854_v6 = vmul.f32 %v1829_v22, %v468_v4 }
 0x130   : > { %1282 = vst [vmem:[%s1872_s23 + $0x120] sm:$0xff] %v1218_v63  ;;  %v855_v7 = vmul.f32 %v1831_v23, %v557_v5  ;;  %v990_v8 = vadd.f32 %v1862_v40, %v852_v2 }
 0x131   : > { %v991_v9 = vadd.f32 %v1864_v41, %v853_v3  ;;  %v992_v10 = vadd.f32 %v1836_v25, %v854_v6 }
 0x132   : > { %v993_v11 = vadd.f32 %v1838_v26, %v855_v7  ;;  %v1128_v12 = vmax.f32 %v990_v8, %v1867_v46 }
 0x133   : > { %v1129_v13 = vmax.f32 %v991_v9, %v1870_v48  ;;  %v1130_v14 = vmax.f32 %v992_v10, %v1843_v31 }
 0x134   : > { %v1131_v15 = vmax.f32 %v993_v11, %v1846_v33 }
 0x135   : > { %v1219_v16 = vpack.c.bf16 %v1129_v13, %v1128_v12  ;;  %v646_v18 = vpop.f32.mrf.mxu2 }
 0x136   : > { %v1220_v17 = vpack.c.bf16 %v1131_v15, %v1130_v14  ;;  %v735_v19 = vpop.f32.mrf.mxu3  ;;  %v856_v20 = vmul.f32 %v1856_v36, %v646_v18  ;;  %v471_v24 = vpop.f32.mrf.mxu0 }
 0x137   : > { %1283 = vst [vmem:[%s1872_s23 + $0x128] sm:$0xff] %v1219_v16  ;;  %v857_v21 = vmul.f32 %v1858_v37, %v735_v19  ;;  %v560_v27 = vpop.f32.mrf.mxu1  ;;  %v858_v28 = vmul.f32 %v1829_v22, %v471_v24 }
 0x138   : > { %1284 = vst [vmem:[%s1872_s23 + $0x130] sm:$0xff] %v1220_v17  ;;  %v859_v29 = vmul.f32 %v1831_v23, %v560_v27  ;;  %v994_v30 = vadd.f32 %v1862_v40, %v856_v20 }
 0x139   : > { %v995_v32 = vadd.f32 %v1864_v41, %v857_v21  ;;  %v996_v34 = vadd.f32 %v1836_v25, %v858_v28 }
 0x13a   : > { %v997_v35 = vadd.f32 %v1838_v26, %v859_v29  ;;  %v1132_v38 = vmax.f32 %v994_v30, %v1867_v46 }
 0x13b   : > { %v1133_v39 = vmax.f32 %v995_v32, %v1870_v48  ;;  %v1134_v42 = vmax.f32 %v996_v34, %v1843_v31 }
 0x13c   : > { %v1135_v43 = vmax.f32 %v997_v35, %v1846_v33 }
 0x13d   : > { %v1221_v44 = vpack.c.bf16 %v1133_v39, %v1132_v38  ;;  %v649_v47 = vpop.f32.mrf.mxu2 }
 0x13e   : > { %v1222_v45 = vpack.c.bf16 %v1135_v43, %v1134_v42  ;;  %v738_v49 = vpop.f32.mrf.mxu3  ;;  %v860_v50 = vmul.f32 %v1856_v36, %v649_v47  ;;  %v473_v52 = vpop.f32.mrf.mxu0 }
 0x13f   : > { %1285 = vst [vmem:[%s1872_s23 + $0x138] sm:$0xff] %v1221_v44  ;;  %v861_v51 = vmul.f32 %v1858_v37, %v738_v49  ;;  %v562_v53 = vpop.f32.mrf.mxu1  ;;  %v862_v54 = vmul.f32 %v1829_v22, %v473_v52 }
 0x140   : > { %1286 = vst [vmem:[%s1872_s23 + $0x140] sm:$0xff] %v1222_v45  ;;  %v863_v55 = vmul.f32 %v1831_v23, %v562_v53  ;;  %v998_v56 = vadd.f32 %v1862_v40, %v860_v50 }
 0x141   : > { %v999_v57 = vadd.f32 %v1864_v41, %v861_v51  ;;  %v1000_v58 = vadd.f32 %v1836_v25, %v862_v54 }
 0x142   : > { %v1001_v59 = vadd.f32 %v1838_v26, %v863_v55  ;;  %v1136_v60 = vmax.f32 %v998_v56, %v1867_v46 }
 0x143   : > { %v1137_v61 = vmax.f32 %v999_v57, %v1870_v48  ;;  %v1138_v62 = vmax.f32 %v1000_v58, %v1843_v31 }
 0x144   : > { %v1139_v63 = vmax.f32 %v1001_v59, %v1846_v33 }
 0x145   : > { %v1223_v0 = vpack.c.bf16 %v1137_v61, %v1136_v60  ;;  %v651_v2 = vpop.f32.mrf.mxu2 }
 0x146   : > { %v1224_v1 = vpack.c.bf16 %v1139_v63, %v1138_v62  ;;  %v740_v3 = vpop.f32.mrf.mxu3  ;;  %v864_v4 = vmul.f32 %v1856_v36, %v651_v2  ;;  %v476_v6 = vpop.f32.mrf.mxu0 }
 0x147   : > { %1287 = vst [vmem:[%s1872_s23 + $0x148] sm:$0xff] %v1223_v0  ;;  %v865_v5 = vmul.f32 %v1858_v37, %v740_v3  ;;  %v565_v7 = vpop.f32.mrf.mxu1  ;;  %v866_v8 = vmul.f32 %v1829_v22, %v476_v6 }
 0x148   : > { %1288 = vst [vmem:[%s1872_s23 + $0x150] sm:$0xff] %v1224_v1  ;;  %v867_v9 = vmul.f32 %v1831_v23, %v565_v7  ;;  %v1002_v10 = vadd.f32 %v1862_v40, %v864_v4 }
 0x149   : > { %v1003_v11 = vadd.f32 %v1864_v41, %v865_v5  ;;  %v1004_v12 = vadd.f32 %v1836_v25, %v866_v8 }
 0x14a   : > { %v1005_v13 = vadd.f32 %v1838_v26, %v867_v9  ;;  %v1140_v14 = vmax.f32 %v1002_v10, %v1867_v46 }
 0x14b   : > { %v1141_v15 = vmax.f32 %v1003_v11, %v1870_v48  ;;  %v1142_v16 = vmax.f32 %v1004_v12, %v1843_v31 }
 0x14c   : > { %v1143_v17 = vmax.f32 %v1005_v13, %v1846_v33 }
 0x14d   : > { %v1225_v18 = vpack.c.bf16 %v1141_v15, %v1140_v14  ;;  %v654_v20 = vpop.f32.mrf.mxu2 }
 0x14e   : > { %v1226_v19 = vpack.c.bf16 %v1143_v17, %v1142_v16  ;;  %v743_v21 = vpop.f32.mrf.mxu3  ;;  %v868_v24 = vmul.f32 %v1856_v36, %v654_v20  ;;  %v478_v28 = vpop.f32.mrf.mxu0 }
 0x14f   : > { %1289 = vst [vmem:[%s1872_s23 + $0x158] sm:$0xff] %v1225_v18  ;;  %v869_v27 = vmul.f32 %v1858_v37, %v743_v21  ;;  %v567_v29 = vpop.f32.mrf.mxu1  ;;  %v870_v30 = vmul.f32 %v1829_v22, %v478_v28 }
 0x150   : > { %1290 = vst [vmem:[%s1872_s23 + $0x160] sm:$0xff] %v1226_v19  ;;  %v871_v32 = vmul.f32 %v1831_v23, %v567_v29  ;;  %v1006_v34 = vadd.f32 %v1862_v40, %v868_v24 }
 0x151   : > { %v1007_v35 = vadd.f32 %v1864_v41, %v869_v27  ;;  %v1008_v38 = vadd.f32 %v1836_v25, %v870_v30 }
 0x152   : > { %v1009_v39 = vadd.f32 %v1838_v26, %v871_v32  ;;  %v1144_v42 = vmax.f32 %v1006_v34, %v1867_v46 }
 0x153   : > { %v1145_v43 = vmax.f32 %v1007_v35, %v1870_v48  ;;  %v1146_v44 = vmax.f32 %v1008_v38, %v1843_v31 }
 0x154   : > { %v1147_v45 = vmax.f32 %v1009_v39, %v1846_v33 }
 0x155   : > { %v1227_v47 = vpack.c.bf16 %v1145_v43, %v1144_v42  ;;  %v656_v50 = vpop.f32.mrf.mxu2 }
 0x156   : > { %v1228_v49 = vpack.c.bf16 %v1147_v45, %v1146_v44  ;;  %v745_v51 = vpop.f32.mrf.mxu3  ;;  %v872_v52 = vmul.f32 %v1856_v36, %v656_v50  ;;  %v481_v54 = vpop.f32.mrf.mxu0 }
 0x157   : > { %1291 = vst [vmem:[%s1872_s23 + $0x168] sm:$0xff] %v1227_v47  ;;  %v873_v53 = vmul.f32 %v1858_v37, %v745_v51  ;;  %v570_v55 = vpop.f32.mrf.mxu1  ;;  %v874_v56 = vmul.f32 %v1829_v22, %v481_v54 }
 0x158   : > { %1292 = vst [vmem:[%s1872_s23 + $0x170] sm:$0xff] %v1228_v49  ;;  %v875_v57 = vmul.f32 %v1831_v23, %v570_v55  ;;  %v1010_v58 = vadd.f32 %v1862_v40, %v872_v52 }
 0x159   : > { %v1011_v59 = vadd.f32 %v1864_v41, %v873_v53  ;;  %v1012_v60 = vadd.f32 %v1836_v25, %v874_v56 }
 0x15a   : > { %v1013_v61 = vadd.f32 %v1838_v26, %v875_v57  ;;  %v1148_v62 = vmax.f32 %v1010_v58, %v1867_v46 }
 0x15b   : > { %v1149_v63 = vmax.f32 %v1011_v59, %v1870_v48  ;;  %v1150_v0 = vmax.f32 %v1012_v60, %v1843_v31 }
 0x15c   : > { %v1151_v1 = vmax.f32 %v1013_v61, %v1846_v33 }
 0x15d   : > { %v1229_v2 = vpack.c.bf16 %v1149_v63, %v1148_v62  ;;  %v659_v4 = vpop.f32.mrf.mxu2 }
 0x15e   : > { %v1230_v3 = vpack.c.bf16 %v1151_v1, %v1150_v0  ;;  %v748_v5 = vpop.f32.mrf.mxu3  ;;  %v876_v6 = vmul.f32 %v1856_v36, %v659_v4  ;;  %v483_v8 = vpop.f32.mrf.mxu0 }
 0x15f   : > { %1293 = vst [vmem:[%s1872_s23 + $0x178] sm:$0xff] %v1229_v2  ;;  %v877_v7 = vmul.f32 %v1858_v37, %v748_v5  ;;  %v572_v9 = vpop.f32.mrf.mxu1  ;;  %v878_v10 = vmul.f32 %v1829_v22, %v483_v8 }
 0x160   : > { %1294 = vst [vmem:[%s1872_s23 + $0x180] sm:$0xff] %v1230_v3  ;;  %v879_v11 = vmul.f32 %v1831_v23, %v572_v9  ;;  %v1014_v12 = vadd.f32 %v1862_v40, %v876_v6 }
 0x161   : > { %v1015_v13 = vadd.f32 %v1864_v41, %v877_v7  ;;  %v1016_v14 = vadd.f32 %v1836_v25, %v878_v10 }
 0x162   : > { %v1017_v15 = vadd.f32 %v1838_v26, %v879_v11  ;;  %v1152_v16 = vmax.f32 %v1014_v12, %v1867_v46 }
 0x163   : > { %v1153_v17 = vmax.f32 %v1015_v13, %v1870_v48  ;;  %v1154_v18 = vmax.f32 %v1016_v14, %v1843_v31 }
 0x164   : > { %v1155_v19 = vmax.f32 %v1017_v15, %v1846_v33 }
 0x165   : > { %v1231_v20 = vpack.c.bf16 %v1153_v17, %v1152_v16  ;;  %v661_v24 = vpop.f32.mrf.mxu2 }
 0x166   : > { %v1232_v21 = vpack.c.bf16 %v1155_v19, %v1154_v18  ;;  %v750_v27 = vpop.f32.mrf.mxu3  ;;  %v880_v28 = vmul.f32 %v1856_v36, %v661_v24  ;;  %v486_v30 = vpop.f32.mrf.mxu0 }
 0x167   : > { %1295 = vst [vmem:[%s1872_s23 + $0x188] sm:$0xff] %v1231_v20  ;;  %v881_v29 = vmul.f32 %v1858_v37, %v750_v27  ;;  %v575_v32 = vpop.f32.mrf.mxu1  ;;  %v882_v34 = vmul.f32 %v1829_v22, %v486_v30 }
 0x168   : > { %1296 = vst [vmem:[%s1872_s23 + $0x190] sm:$0xff] %v1232_v21  ;;  %v883_v35 = vmul.f32 %v1831_v23, %v575_v32  ;;  %v1018_v38 = vadd.f32 %v1862_v40, %v880_v28 }
 0x169   : > { %v1019_v39 = vadd.f32 %v1864_v41, %v881_v29  ;;  %v1020_v42 = vadd.f32 %v1836_v25, %v882_v34 }
 0x16a   : > { %v1021_v43 = vadd.f32 %v1838_v26, %v883_v35  ;;  %v1156_v44 = vmax.f32 %v1018_v38, %v1867_v46 }
 0x16b   : > { %v1157_v45 = vmax.f32 %v1019_v39, %v1870_v48  ;;  %v1158_v47 = vmax.f32 %v1020_v42, %v1843_v31 }
 0x16c   : > { %v1159_v49 = vmax.f32 %v1021_v43, %v1846_v33 }
 0x16d   : > { %v1233_v50 = vpack.c.bf16 %v1157_v45, %v1156_v44  ;;  %v664_v52 = vpop.f32.mrf.mxu2 }
 0x16e   : > { %v1234_v51 = vpack.c.bf16 %v1159_v49, %v1158_v47  ;;  %v753_v53 = vpop.f32.mrf.mxu3  ;;  %v884_v54 = vmul.f32 %v1856_v36, %v664_v52  ;;  %v488_v56 = vpop.f32.mrf.mxu0 }
 0x16f   : > { %1297 = vst [vmem:[%s1872_s23 + $0x198] sm:$0xff] %v1233_v50  ;;  %v885_v55 = vmul.f32 %v1858_v37, %v753_v53  ;;  %v577_v57 = vpop.f32.mrf.mxu1  ;;  %v886_v58 = vmul.f32 %v1829_v22, %v488_v56 }
 0x170   : > { %1298 = vst [vmem:[%s1872_s23 + $0x1a0] sm:$0xff] %v1234_v51  ;;  %v887_v59 = vmul.f32 %v1831_v23, %v577_v57  ;;  %v1022_v60 = vadd.f32 %v1862_v40, %v884_v54 }
 0x171   : > { %v1023_v61 = vadd.f32 %v1864_v41, %v885_v55  ;;  %v1024_v62 = vadd.f32 %v1836_v25, %v886_v58 }
 0x172   : > { %v1025_v63 = vadd.f32 %v1838_v26, %v887_v59  ;;  %v1160_v0 = vmax.f32 %v1022_v60, %v1867_v46 }
 0x173   : > { %v1161_v1 = vmax.f32 %v1023_v61, %v1870_v48  ;;  %v1162_v2 = vmax.f32 %v1024_v62, %v1843_v31 }
 0x174   : > { %v1163_v3 = vmax.f32 %v1025_v63, %v1846_v33 }
 0x175   : > { %v1235_v4 = vpack.c.bf16 %v1161_v1, %v1160_v0  ;;  %v666_v6 = vpop.f32.mrf.mxu2 }
 0x176   : > { %v1236_v5 = vpack.c.bf16 %v1163_v3, %v1162_v2  ;;  %v755_v7 = vpop.f32.mrf.mxu3  ;;  %v888_v8 = vmul.f32 %v1856_v36, %v666_v6  ;;  %v491_v10 = vpop.f32.mrf.mxu0 }
 0x177   : > { %1299 = vst [vmem:[%s1872_s23 + $0x1a8] sm:$0xff] %v1235_v4  ;;  %v889_v9 = vmul.f32 %v1858_v37, %v755_v7  ;;  %v580_v11 = vpop.f32.mrf.mxu1  ;;  %v890_v12 = vmul.f32 %v1829_v22, %v491_v10 }
 0x178   : > { %1300 = vst [vmem:[%s1872_s23 + $0x1b0] sm:$0xff] %v1236_v5  ;;  %v891_v13 = vmul.f32 %v1831_v23, %v580_v11  ;;  %v1026_v14 = vadd.f32 %v1862_v40, %v888_v8 }
 0x179   : > { %v1027_v15 = vadd.f32 %v1864_v41, %v889_v9  ;;  %v1028_v16 = vadd.f32 %v1836_v25, %v890_v12 }
 0x17a   : > { %v1029_v17 = vadd.f32 %v1838_v26, %v891_v13  ;;  %v1164_v18 = vmax.f32 %v1026_v14, %v1867_v46 }
 0x17b   : > { %v1165_v19 = vmax.f32 %v1027_v15, %v1870_v48  ;;  %v1166_v20 = vmax.f32 %v1028_v16, %v1843_v31 }
 0x17c   : > { %v1167_v21 = vmax.f32 %v1029_v17, %v1846_v33 }
 0x17d   : > { %v1237_v24 = vpack.c.bf16 %v1165_v19, %v1164_v18  ;;  %v669_v28 = vpop.f32.mrf.mxu2 }
 0x17e   : > { %v1238_v27 = vpack.c.bf16 %v1167_v21, %v1166_v20  ;;  %v758_v29 = vpop.f32.mrf.mxu3  ;;  %v892_v30 = vmul.f32 %v1856_v36, %v669_v28  ;;  %v493_v34 = vpop.f32.mrf.mxu0 }
 0x17f   : > { %1301 = vst [vmem:[%s1872_s23 + $0x1b8] sm:$0xff] %v1237_v24  ;;  %v893_v32 = vmul.f32 %v1858_v37, %v758_v29  ;;  %v582_v35 = vpop.f32.mrf.mxu1  ;;  %v894_v38 = vmul.f32 %v1829_v22, %v493_v34 }
 0x180   : > { %1302 = vst [vmem:[%s1872_s23 + $0x1c0] sm:$0xff] %v1238_v27  ;;  %v895_v39 = vmul.f32 %v1831_v23, %v582_v35  ;;  %v1030_v42 = vadd.f32 %v1862_v40, %v892_v30 }
 0x181   : > { %v1031_v43 = vadd.f32 %v1864_v41, %v893_v32  ;;  %v1032_v44 = vadd.f32 %v1836_v25, %v894_v38 }
 0x182   : > { %v1033_v45 = vadd.f32 %v1838_v26, %v895_v39  ;;  %v1168_v47 = vmax.f32 %v1030_v42, %v1867_v46 }
 0x183   : > { %v1169_v49 = vmax.f32 %v1031_v43, %v1870_v48  ;;  %v1170_v50 = vmax.f32 %v1032_v44, %v1843_v31 }
 0x184   : > { %v1171_v51 = vmax.f32 %v1033_v45, %v1846_v33 }
 0x185   : > { %v1239_v52 = vpack.c.bf16 %v1169_v49, %v1168_v47  ;;  %v671_v54 = vpop.f32.mrf.mxu2 }
 0x186   : > { %v1240_v53 = vpack.c.bf16 %v1171_v51, %v1170_v50  ;;  %v760_v55 = vpop.f32.mrf.mxu3  ;;  %v896_v56 = vmul.f32 %v1856_v36, %v671_v54  ;;  %v496_v58 = vpop.f32.mrf.mxu0 }
 0x187   : > { %1303 = vst [vmem:[%s1872_s23 + $0x1c8] sm:$0xff] %v1239_v52  ;;  %v897_v57 = vmul.f32 %v1858_v37, %v760_v55  ;;  %v585_v59 = vpop.f32.mrf.mxu1  ;;  %v898_v60 = vmul.f32 %v1829_v22, %v496_v58 }
 0x188   : > { %1304 = vst [vmem:[%s1872_s23 + $0x1d0] sm:$0xff] %v1240_v53  ;;  %v899_v61 = vmul.f32 %v1831_v23, %v585_v59  ;;  %v1034_v62 = vadd.f32 %v1862_v40, %v896_v56 }
 0x189   : > { %v1035_v63 = vadd.f32 %v1864_v41, %v897_v57  ;;  %v1036_v0 = vadd.f32 %v1836_v25, %v898_v60 }
 0x18a   : > { %v1037_v1 = vadd.f32 %v1838_v26, %v899_v61  ;;  %v1172_v2 = vmax.f32 %v1034_v62, %v1867_v46 }
 0x18b   : > { %v1173_v3 = vmax.f32 %v1035_v63, %v1870_v48  ;;  %v1174_v4 = vmax.f32 %v1036_v0, %v1843_v31 }
 0x18c   : > { %v1175_v5 = vmax.f32 %v1037_v1, %v1846_v33 }
 0x18d   : > { %v1241_v6 = vpack.c.bf16 %v1173_v3, %v1172_v2  ;;  %v674_v8 = vpop.f32.mrf.mxu2 }
 0x18e   : > { %v1242_v7 = vpack.c.bf16 %v1175_v5, %v1174_v4  ;;  %v763_v9 = vpop.f32.mrf.mxu3  ;;  %v900_v10 = vmul.f32 %v1856_v36, %v674_v8  ;;  %v498_v12 = vpop.f32.mrf.mxu0 }
 0x18f   : > { %1305 = vst [vmem:[%s1872_s23 + $0x1d8] sm:$0xff] %v1241_v6  ;;  %v901_v11 = vmul.f32 %v1858_v37, %v763_v9  ;;  %v587_v13 = vpop.f32.mrf.mxu1  ;;  %v902_v14 = vmul.f32 %v1829_v22, %v498_v12 }
 0x190   : > { %1306 = vst [vmem:[%s1872_s23 + $0x1e0] sm:$0xff] %v1242_v7  ;;  %v903_v15 = vmul.f32 %v1831_v23, %v587_v13  ;;  %v1038_v16 = vadd.f32 %v1862_v40, %v900_v10 }
 0x191   : > { %v1039_v17 = vadd.f32 %v1864_v41, %v901_v11  ;;  %v1040_v18 = vadd.f32 %v1836_v25, %v902_v14 }
 0x192   : > { %v1041_v19 = vadd.f32 %v1838_v26, %v903_v15  ;;  %v1176_v20 = vmax.f32 %v1038_v16, %v1867_v46 }
 0x193   : > { %v1177_v21 = vmax.f32 %v1039_v17, %v1870_v48  ;;  %v1178_v22 = vmax.f32 %v1040_v18, %v1843_v31 }
 0x194   : > { %v1179_v24 = vmax.f32 %v1041_v19, %v1846_v33 }
 0x195   : > { %v1243_v23 = vpack.c.bf16 %v1177_v21, %v1176_v20  ;;  %v676_v28 = vpop.f32.mrf.mxu2 }
 0x196   : > { %v1244_v27 = vpack.c.bf16 %v1179_v24, %v1178_v22  ;;  %v765_v29 = vpop.f32.mrf.mxu3  ;;  %v904_v25 = vmul.f32 %v1856_v36, %v676_v28 }
 0x197   : > { %1307 = vst [vmem:[%s1872_s23 + $0x1e8] sm:$0xff] %v1243_v23  ;;  %v905_v26 = vmul.f32 %v1858_v37, %v765_v29 }
 0x198   : > { %1308 = vst [vmem:[%s1872_s23 + $0x1f0] sm:$0xff] %v1244_v27  ;;  %v1042_v31 = vadd.f32 %v1862_v40, %v904_v25 }
 0x199   : > { %v1043_v33 = vadd.f32 %v1864_v41, %v905_v26 }
 0x19a   : > { %v1180_v30 = vmax.f32 %v1042_v31, %v1867_v46 }
 0x19b   : > { %v1181_v32 = vmax.f32 %v1043_v33, %v1870_v48 }
 0x19d   : > { %v1245_v34 = vpack.c.bf16 %v1181_v32, %v1180_v30 }
 0x19f   : > { %1309 = vst [vmem:[%s1872_s23 + $0x1f8] sm:$0xff] %v1245_v34 }
 0x1a0   : > { %1636 = shalt.err (!%p1633_p3)
}
 0x1a1   : > { %s1673_s16 = smov 256   ;;  %s1674_s17 = smov 16  }
 0x1a2   : > { %1568 = dma.vmem_to_hbm [thread:$0]  (%p1743_p5), %s1325_s22, 8192, %s1327_s7, %s1311_s8, %s1673_s16, %s1673_s16, %s1674_s17  }
 0x1a3 PF: > { %p1574_p4 = scmp.ge.s32.totalorder %s1671_s21, 2  ;;  %s1341_s23 = sand.u32 1, %s1659_s18  }
 0x1a4   : > { %s1342_s25 = scalar_lea.sflag [#allocation3], %s1341_s23 }
 0x1a5   : > { %p1571_p7 = pnand %p1574_p4, %p1747_p6 }
 0x1a7   : > { %p1572_p8 = pneg %p1571_p7 }
 0x1a9   : > { %1654 = dma.done.wait (%p1572_p8), %s1342_s25, 8192  }
 0x1aa   : > { %1656 = vsyncadd (%p1572_p8), %s1342_s25, 4294959104  ;;  %p15_p9 = scmp.ge.s32.totalorder %s1730_s24, 4   ;;  %s2391_s18 = smov %s1663_s19 }
 0x1ab   : > { %s2392_s19 = smov %s1667_s20  ;;  %s2393_s20 = smov %s1741_s27 }
 0x1ac   : > { %s2394_s21 = smov %s1730_s24  ;;  %17 = sbr.rel (!%p15_p9) target bundleno = 3 (0x3), region = 75 }
 0x1b1   :  { %1348 = vsyncpa [#allocation3], 1 }
 0x1b2   :  { %1350 = vsyncpa [#allocation3 + $0x1], 1 }

</bundles_post_ra>
